<compile_context>
chip_gen: v7x
topology: tpu7x:2x2x1
jax: 0.10.0
libtpu: 0.0.40
codegen_flags: <defaults>
</compile_context>

<pallas_src>
import functools

import jax
import jax.numpy as jnp
from jax.experimental import pallas as pl
from jax.experimental.pallas import tpu as pltpu


def _round_up(x: int, k: int) -> int:
    return (x + k - 1) // k * k


def _bce_kernel(ti_ref, sim_ref, out_ref, acc_ref, *,
                pos_weight, inv_total, n_rows, tn, blocks_per_core):
    """Grid = (core, row_block). Each step accumulates an (8, m) partial sum."""
    c = pl.program_id(0)
    i = pl.program_id(1)

    @pl.when(i == 0)
    def _():
        acc_ref[...] = jnp.zeros_like(acc_ref)

    x = sim_ref[...].astype(jnp.float32)                      # (tn, m)
    m = x.shape[1]

    # Global row index of each element (the index_map clamps the block, but we
    # compute the *unclamped* row id here so out-of-range rows mask to zero).
    blk = c * blocks_per_core + i
    row0 = blk * tn
    rows = jax.lax.broadcasted_iota(jnp.int32, (tn, m), 0) + row0
    cols = jax.lax.broadcasted_iota(jnp.int32, (tn, m), 1)

    is_true = cols == ti_ref[...]                             # (tn, 1) -> (tn, m)

    # softplus(-x), stable: max(-x, 0) + log1p(exp(-|x|))
    sp = jnp.maximum(-x, 0.0) + jnp.log1p(jnp.exp(-jnp.abs(x)))
    loss = jnp.where(is_true, pos_weight * sp, x + sp)

    # Mask rows past the end of the array (tail tile / idle core).
    loss = jnp.where(rows < n_rows, loss, 0.0)

    # Partial reduce (tn, m) -> (8, m): pure vreg adds, no cross-lane XLU work.
    acc_ref[...] += loss.reshape(tn // 8, 8, m).sum(axis=0)

    @pl.when(i == pl.num_programs(1) - 1)
    def _():
        out_ref[...] = (jnp.sum(acc_ref[...]) * inv_total).reshape(1, 1, 1)


def bce_loss(similarities: jax.Array, true_indices: jax.Array, *,
             balance: bool = False, max_tn: int = 512) -> jax.Array:
    """Pallas TPU implementation of kgm BCELoss.forward (mean reduction)."""
    n, m = similarities.shape

    pos_weight = float(m - 1) if balance else 1.0
    inv_total = 1.0 / float(n * m)

    # Row tile: as large as possible under a conservative VMEM budget
    # (double-buffered f32 sim tiles must fit well under the scoped limit on
    # every generation, including v7x's smaller physical VMEM).
    tile_budget_bytes = 12 * 1024 * 1024
    tn_cap = max(8, (tile_budget_bytes // (2 * m * 4)) // 8 * 8)
    tn = min(max_tn, tn_cap, _round_up(n, 8))
    tn = max(8, (tn // 8) * 8)

    nb = pl.cdiv(n, tn)          # total row blocks
    ncores = 2                   # split across 2 TCs on v7x; outer loop elsewhere
    ncb = pl.cdiv(nb, ncores)    # row blocks per core

    ti2d = true_indices.astype(jnp.int32).reshape(n, 1)

    def row_block_map(c, i):
        # Clamp so a fully-out-of-range (c, i) still maps to a legal block;
        # its contribution is masked to zero inside the kernel.
        return (jnp.minimum(c * ncb + i, nb - 1), 0)

    kernel = functools.partial(
        _bce_kernel,
        pos_weight=pos_weight,
        inv_total=inv_total,
        n_rows=n,
        tn=tn,
        blocks_per_core=ncb,
    )

    partials = pl.pallas_call(
        kernel,
        out_shape=jax.ShapeDtypeStruct((ncores, 1, 1), jnp.float32),
        grid_spec=pltpu.PrefetchScalarGridSpec(
            num_scalar_prefetch=0,
            grid=(ncores, ncb),
            in_specs=[
                pl.BlockSpec((tn, 1), row_block_map),   # true_indices tile
                pl.BlockSpec((tn, m), row_block_map),   # similarities tile
            ],
            out_specs=pl.BlockSpec((1, 1, 1), lambda c, i: (c, 0, 0)),
            scratch_shapes=[pltpu.VMEM((8, m), jnp.float32)],
        ),
        compiler_params=pltpu.CompilerParams(
            dimension_semantics=("parallel", "arbitrary"),
            vmem_limit_bytes=40 * 1024 * 1024,
        ),
    )(ti2d, similarities)

    # Each partial is already scaled by 1/(n*m); summing the two gives the mean.
    return jnp.sum(partials)


def _bce_loss_ref(similarities, true_indices, balance=False):
    n, m = similarities.shape
    x = similarities.astype(jnp.float32)
    t = jax.nn.one_hot(true_indices, m, dtype=jnp.float32)
    pos_w = float(m - 1) if balance else 1.0
    sp_neg_x = jnp.maximum(-x, 0.0) + jnp.log1p(jnp.exp(-jnp.abs(x)))
    loss = pos_w * t * sp_neg_x + (1.0 - t) * (x + sp_neg_x)
    return jnp.mean(loss)


if __name__ == "__main__":
    key = jax.random.PRNGKey(0)

    ok = True
    # (n, m, max_tn): cover the basic path, a ragged tail tile, and a multi-block
    # split across the two partial accumulators.
    cases = [(16, 32, 512), (20, 48, 16), (40, 32, 16)]
    for (n, m, max_tn) in cases:
        k_case = jax.random.fold_in(key, n * 1000 + m)
        k_sim, k_idx = jax.random.split(k_case)
        similarities = jax.random.normal(k_sim, (n, m), dtype=jnp.float32) * 2.0
        true_indices = jax.random.randint(k_idx, (n,), 0, m, dtype=jnp.int32)

        for balance in (False, True):
            out = bce_loss(similarities, true_indices, balance=balance, max_tn=max_tn)
            out = jax.block_until_ready(out)
            ref = _bce_loss_ref(similarities, true_indices, balance=balance)
            if not jnp.allclose(out, ref, rtol=1e-5, atol=1e-5):
                ok = False

    if ok:
        print("KERNEL_OK")
</pallas_src>

<mosaic_0001>
module attributes {stable_mosaic.version = 11 : i64} {
  func.func @_bce_kernel(%arg0: i32, %arg1: i32, %arg2: memref<16x1xi32, #tpu.memory_space<vmem>>, %arg3: memref<16x32xf32, #tpu.memory_space<vmem>>, %arg4: memref<1x1x1xf32, #tpu.memory_space<vmem>>, %arg5: memref<8x32xf32, #tpu.memory_space<vmem>>) attributes {dimension_semantics = [#tpu.dimension_semantics<parallel>, #tpu.dimension_semantics<arbitrary>], iteration_bounds = array<i64: 2, 1>, scalar_prefetch = 0 : i64, scratch_operands = 1 : i64, tpu.core_type = #tpu.core_type<tc>, window_params = [{transform_indices = @transform_0, window_bounds = array<i64: 16, 1>}, {transform_indices = @transform_1, window_bounds = array<i64: 16, 32>}, {transform_indices = @transform_2, window_bounds = array<i64: 1, 1, 1>}]} {
    %c0_i32 = arith.constant 0 : i32
    %0 = arith.cmpi eq, %arg1, %c0_i32 : i32
    %1 = arith.extui %0 : i1 to i32
    %c0_i32_0 = arith.constant 0 : i32
    %2 = arith.cmpi ne, %1, %c0_i32_0 : i32
    scf.if %2 {
      %cst_16 = arith.constant 0.000000e+00 : f32
      %40 = vector.broadcast %cst_16 : f32 to vector<8x32xf32>
      %c0_17 = arith.constant 0 : index
      %c0_18 = arith.constant 0 : index
      %41 = vector.load %arg5[%c0_17, %c0_18] : memref<8x32xf32, #tpu.memory_space<vmem>>, vector<8x32xf32>
      tpu.vector_store %arg5[%c0_17, %c0_18], %40 {strides = array<i32>} : memref<8x32xf32, #tpu.memory_space<vmem>>, vector<8x32xf32>,
    } else {
    }
    %c0 = arith.constant 0 : index
    %c0_1 = arith.constant 0 : index
    %3 = vector.load %arg3[%c0, %c0_1] : memref<16x32xf32, #tpu.memory_space<vmem>>, vector<16x32xf32>
    %c1_i32 = arith.constant 1 : i32
    %4 = arith.muli %arg0, %c1_i32 : i32
    %5 = arith.addi %4, %arg1 : i32
    %c16_i32 = arith.constant 16 : i32
    %6 = arith.muli %5, %c16_i32 : i32
    %7 = tpu.iota {dimensions = array<i32: 0>} : vector<16x32xi32>
    %8 = vector.broadcast %6 : i32 to vector<16x32xi32>
    %9 = arith.addi %7, %8 : vector<16x32xi32>
    %10 = tpu.iota {dimensions = array<i32: 1>} : vector<16x32xi32>
    %c0_2 = arith.constant 0 : index
    %c0_3 = arith.constant 0 : index
    %11 = vector.load %arg2[%c0_2, %c0_3] : memref<16x1xi32, #tpu.memory_space<vmem>>, vector<16x1xi32>
    %12 = vector.broadcast %11 : vector<16x1xi32> to vector<16x32xi32>
    %13 = arith.cmpi eq, %10, %12 : vector<16x32xi32>
    %cst = arith.constant 0.000000e+00 : f32
    %14 = vector.broadcast %cst : f32 to vector<16x32xf32>
    %15 = arith.subf %14, %3 : vector<16x32xf32>
    %cst_4 = arith.constant 0.000000e+00 : f32
    %16 = vector.broadcast %cst_4 : f32 to vector<16x32xf32>
    %17 = arith.maximumf %15, %16 : vector<16x32xf32>
    %18 = math.absf %3 : vector<16x32xf32>
    %cst_5 = arith.constant 0.000000e+00 : f32
    %19 = vector.broadcast %cst_5 : f32 to vector<16x32xf32>
    %20 = arith.subf %19, %18 : vector<16x32xf32>
    %21 = math.exp %20 : vector<16x32xf32>
    %22 = math.log1p %21 : vector<16x32xf32>
    %23 = arith.addf %17, %22 : vector<16x32xf32>
    %cst_6 = arith.constant 1.000000e+00 : f32
    %24 = vector.broadcast %cst_6 : f32 to vector<16x32xf32>
    %25 = arith.mulf %24, %23 : vector<16x32xf32>
    %26 = arith.addf %3, %23 : vector<16x32xf32>
    %27 = arith.select %13, %25, %26 : vector<16x32xi1>, vector<16x32xf32>
    %c16_i32_7 = arith.constant 16 : i32
    %28 = vector.broadcast %c16_i32_7 : i32 to vector<16x32xi32>
    %29 = arith.cmpi slt, %9, %28 : vector<16x32xi32>
    %cst_8 = arith.constant 0.000000e+00 : f32
    %30 = vector.broadcast %cst_8 : f32 to vector<16x32xf32>
    %31 = arith.select %29, %27, %30 : vector<16x32xi1>, vector<16x32xf32>
    %c0_9 = arith.constant 0 : index
    %c0_10 = arith.constant 0 : index
    %32 = vector.load %arg5[%c0_9, %c0_10] : memref<8x32xf32, #tpu.memory_space<vmem>>, vector<8x32xf32>
    %33 = vector.shape_cast %31 : vector<16x32xf32> to vector<2x8x32xf32>
    %cst_11 = arith.constant dense<0.000000e+00> : vector<8x32xf32>
    %34 = vector.multi_reduction <add>, %33, %cst_11 [0] : vector<2x8x32xf32> to vector<8x32xf32>
    %35 = arith.addf %32, %34 : vector<8x32xf32>
    %c0_12 = arith.constant 0 : index
    %c0_13 = arith.constant 0 : index
    %36 = vector.load %arg5[%c0_12, %c0_13] : memref<8x32xf32, #tpu.memory_space<vmem>>, vector<8x32xf32>
    tpu.vector_store %arg5[%c0_12, %c0_13], %35 {strides = array<i32>} : memref<8x32xf32, #tpu.memory_space<vmem>>, vector<8x32xf32>,
    %c0_i32_14 = arith.constant 0 : i32
    %37 = arith.cmpi eq, %arg1, %c0_i32_14 : i32
    %38 = arith.extui %37 : i1 to i32
    %c0_i32_15 = arith.constant 0 : i32
    %39 = arith.cmpi ne, %38, %c0_i32_15 : i32
    scf.if %39 {
      %c0_16 = arith.constant 0 : index
      %c0_17 = arith.constant 0 : index
      %40 = vector.load %arg5[%c0_16, %c0_17] : memref<8x32xf32, #tpu.memory_space<vmem>>, vector<8x32xf32>
      %41 = vector.shape_cast %40 : vector<8x32xf32> to vector<1x8x32xf32>
      %cst_18 = arith.constant dense<0.000000e+00> : vector<1xf32>
      %42 = vector.multi_reduction <add>, %41, %cst_18 [1, 2] : vector<1x8x32xf32> to vector<1xf32>
      %43 = vector.shape_cast %42 : vector<1xf32> to vector<1x1x1xf32>
      %44 = vector.extract %43[0, 0, 0] : f32 from vector<1x1x1xf32>
      %cst_19 = arith.constant 0.001953125 : f32
      %45 = arith.mulf %44, %cst_19 : f32
      %46 = vector.broadcast %45 : f32 to vector<1x1x1xf32>
      %c0_20 = arith.constant 0 : index
      %c0_21 = arith.constant 0 : index
      %c0_22 = arith.constant 0 : index
      %47 = vector.load %arg4[%c0_20, %c0_21, %c0_22] : memref<1x1x1xf32, #tpu.memory_space<vmem>>, vector<1x1x1xf32>
      tpu.vector_store %arg4[%c0_20, %c0_21, %c0_22], %46 {strides = array<i32>} : memref<1x1x1xf32, #tpu.memory_space<vmem>>, vector<1x1x1xf32>,
    } else {
    }
    return
  }
  func.func @transform_0(%arg0: i32, %arg1: i32) -> (i32, i32) {
    %c1_i32 = arith.constant 1 : i32
    %0 = arith.muli %arg0, %c1_i32 : i32
    %1 = arith.addi %0, %arg1 : i32
    %c0_i32 = arith.constant 0 : i32
    %2 = arith.minsi %1, %c0_i32 : i32
    %c0_i32_0 = arith.constant 0 : i32
    %c0_i32_1 = arith.constant 0 : i32
    return %2, %c0_i32_0 : i32, i32
  }
  func.func @transform_1(%arg0: i32, %arg1: i32) -> (i32, i32) {
    %c1_i32 = arith.constant 1 : i32
    %0 = arith.muli %arg0, %c1_i32 : i32
    %1 = arith.addi %0, %arg1 : i32
    %c0_i32 = arith.constant 0 : i32
    %2 = arith.minsi %1, %c0_i32 : i32
    %c0_i32_0 = arith.constant 0 : i32
    %c0_i32_1 = arith.constant 0 : i32
    return %2, %c0_i32_0 : i32, i32
  }
  func.func @transform_2(%arg0: i32, %arg1: i32) -> (i32, i32, i32) {
    %c0_i32 = arith.constant 0 : i32
    %c0_i32_0 = arith.constant 0 : i32
    %c0_i32_1 = arith.constant 0 : i32
    return %arg0, %c0_i32, %c0_i32_0 : i32, i32, i32
  }
}

</mosaic_0001>

<bundles_post_ra>
// kernel: tpu_custom_call.1
= control target key start
LH: loop header
LB: loop body
LE: loop exit
PB: predicated region body
PF: predicated region fallthrough
CT: control target
= control target key end

     0   :  { %s468_s9 = smov 0   ;;  %s470_s10 = smov 0   ;;  %s516_s0 = inlined_call_operand.vmem [shape: s32[16,1], index: 0, kind: input, shape index: {}]   ;;  %s517_s1 = inlined_call_operand.vmem [shape: f32[16,32], index: 1, kind: input, shape index: {}]   ;;  %s518_s2 = inlined_call_operand.vmem [shape: f32[2,1,1], index: 2, kind: output, shape index: {}]  }
   0x1   :  { %s472_s11 = smov 0  }
   0x2 LB: > { %s24_s12 = sadd.s32 1, %s445_s10  ;;  %p382_p0 = scmp.ge.s32.totalorder %s449_s11, 1  ;;  %s449_s11 = sphi %s472_s11, %s12_s11   ;;  %s445_s10 = sphi %s470_s10, %s520_s10   ;;  %s441_s9 = sphi %s468_s9, %s519_s9  }
   0x3   : > { %p26_p1 = scmp.ge.s32.totalorder %s24_s12, 2  ;;  %p160_p2 = scmp.lt.s32.totalorder %s449_s11, 3 }
   0x5   : > { %s522_s12 = smov (%p26_p1, %s24_s12), 0  ;;  %p161_p3 = pnand %p382_p0, %p160_p2 }
   0x6   : > { %p192_p4 = scmp.lt.s32.totalorder (!%p161_p3), %s441_s9, 0  ;;  %v451_v0 = vmov (!%p161_p3), 0   ;;  %vm222_vm0 = vcmask (!%p161_p3), 261120   ;;  %v452_v3 = vmov (!%p161_p3), 0.0   ;;  %v228_v29 = vlaneseq (!%p161_p3)  ;;  %s387_s22 = sshll.u32 (!%p161_p3), %s441_s9, 4 }
   0x7   : > { %164 = sbr.rel (%p161_p3) target bundleno = 380 (0x17c), region = 28  ;;  %418 = vset.pattern.permute.xlu0 (!%p161_p3), %v451_v0  ;;  %223 = vst.msk [vmem:[#allocation2] sm:$0xff] (!%p161_p3), %vm222_vm0, %v452_v3  ;;  %v231_v37 = vstv (!%p161_p3), %s387_s22  ;;  %p215_p6 = scmp.lt.s32.totalorder (!%p161_p3), %s441_s9, 1  ;;  %vm309_vm7 = vcmask (!%p161_p3), 0  }
   0x8   : > { %v229_v35 = vshrl.u32 (!%p161_p3), %v228_v29, 7  ;;  %v235_v39 = vand.u32 (!%p161_p3), 127, %v228_v29 }
   0xa   : > { %v230_v38 = vadd.s32 (!%p161_p3), 8, %v229_v35  ;;  %v232_v42 = vadd.s32 (!%p161_p3), %v231_v37, %v229_v35 }
   0xc   : > { %v233_v44 = vadd.s32 (!%p161_p3), %v231_v37, %v230_v38  ;;  %vm282_vm4 = vcmp.lt.s32.totalorder (!%p161_p3), %v232_v42, 16 }
   0xe   : > { %s193_s13 = scalar_select %p192_p4, %s441_s9, 0  ;;  %vm283_vm5 = vcmp.lt.s32.totalorder %v233_v44, 16  ;;  %v286_v52 = vld [vmem:[#allocation2] sm:$0xff] }
   0xf   : > { %s526_s9 = smov (!%p215_p6, %s441_s9), 1 }
  0x10   : > { %s383_s14 = sshll.u32 %s193_s13, 1  ;;  %s217_s26 = scalar_lea.vmem %s518_s2, %s526_s9 }
  0x11   : > { %p195_p5 = scmp.lt.s32.totalorder %s383_s14, 1 }
  0x13   : > { %s524_s14 = smov (!%p195_p5, %s383_s14), 1 }
  0x14   : > { %s384_s15 = sshll.u32 %s524_s14, 3 }
  0x15   : > { %s198_s18 = scalar_lea.vmem %s516_s0, %s384_s15  ;;  %s210_s21 = scalar_lea.vmem %s517_s1, %s384_s15 }
  0x16   : > { %v236_v1 = vld [vmem:[%s198_s18] sm:$0xff]  ;;  %v237_v2 = vld [vmem:[%s198_s18 + $0x8] sm:$0xff] }
  0x17   : > { %239 = vperm.xlu0 %418, %v236_v1   ;;  %v224_v4 = vld [vmem:[%s210_s21] sm:$0xff]  ;;  %v225_v6 = vld [vmem:[%s210_s21 + $0x8] sm:$0xff] }
  0x18   : > { %v250_v5 = vand.u32 2147483647, %v224_v4  ;;  %v251_v7 = vand.u32 2147483647, %v225_v6  ;;  %v246_v21 = vsub.f32 0.0, %v224_v4  ;;  %v247_v27 = vsub.f32 0.0, %v225_v6 }
  0x1a   : > { %v252_v8 = vsub.f32 0.0, %v250_v5  ;;  %v253_v9 = vsub.f32 0.0, %v251_v7  ;;  %v248_v28 = vmax.f32 %v246_v21, 0.0  ;;  %v249_v33 = vmax.f32 %v247_v27, 0.0 }
  0x1b   : > { %242 = vperm.xlu0 %418, %v237_v2  }
  0x1c   : > { %v254_v10 = vmul.f32 1.442695, %v252_v8  ;;  %v256_v11 = vmul.f32 1.442695, %v253_v9 }
  0x1e   : > { %419 = vpow2.f32 %v254_v10 }
  0x1f   : > { %421 = vpow2.f32 %v256_v11 }
  0x28   : > { %v420_v12 = vpop.eup %419 }
  0x29   : > { %v258_v13 = vadd.f32 1.0, %v420_v12  ;;  %v422_v14 = vpop.eup %421  ;;  %v261_v16 = vmul.f32 -0.5, %v420_v12  ;;  %v264_v20 = vand.u32 2147483647, %v420_v12 }
  0x2a   : > { %v267_v15 = vadd.f32 1.0, %v422_v14  ;;  %v270_v18 = vmul.f32 -0.5, %v422_v14  ;;  %v273_v26 = vand.u32 2147483647, %v422_v14 }
  0x2b   : > { %423 = vlog2.f32 %v258_v13  ;;  %v262_v17 = vadd.f32 1.0, %v261_v16  ;;  %vm265_vm1 = vcmp.lt.f32.partialorder %v264_v20, 0.0004427343 }
  0x2c   : > { %425 = vlog2.f32 %v267_v15  ;;  %v271_v24 = vadd.f32 1.0, %v270_v18  ;;  %vm274_vm2 = vcmp.lt.f32.partialorder %v273_v26, 0.0004427343 }
  0x2d   : > { %v263_v23 = vmul.f32 %v420_v12, %v262_v17 }
  0x2e   : > { %v272_v32 = vmul.f32 %v422_v14, %v271_v24 }
  0x35   : > { %v424_v19 = vpop.eup %423 }
  0x36   : > { %v260_v22 = vmul.f32 0.6931472, %v424_v19  ;;  %v426_v25 = vpop.eup %425 }
  0x37   : > { %v269_v31 = vmul.f32 0.6931472, %v426_v25 }
  0x38   : > { %v266_v30 = vsel %vm265_vm1, %v263_v23, %v260_v22 }
  0x39   : > { %v276_v34 = vadd.f32 %v266_v30, %v248_v28  ;;  %v275_v36 = vsel %vm274_vm2, %v272_v32, %v269_v31 }
  0x3a   : > { %v277_v40 = vadd.f32 %v275_v36, %v249_v33 }
  0x3b   : > { %v278_v41 = vadd.f32 %v276_v34, %v224_v4 }
  0x3c   : > { %v279_v45 = vadd.f32 %v277_v40, %v225_v6 }
  0x96   : > { %v240_v43 = vpop.permute.xlu0 %239 }
  0x97   : > { %vm244_vm3 = vcmp.eq.s32.totalorder %v235_v39, %v240_v43 }
  0x98   : > { %v280_v46 = vsel %vm244_vm3, %v276_v34, %v278_v41 }
  0x99   : > { %v284_v48 = vsel %vm282_vm4, %v280_v46, 0.0 }
  0x9a   : > { %v243_v47 = vpop.permute.xlu0 %242  ;;  %v288_v51 = vsel %vm222_vm0, %v284_v48, 0.0 }
  0x9b   : > { %vm245_vm6 = vcmp.eq.s32.totalorder %v235_v39, %v243_v47 }
  0x9c   : > { %v281_v49 = vsel %vm245_vm6, %v277_v40, %v279_v45 }
  0x9d   : > { %v285_v50 = vsel %vm283_vm5, %v281_v49, 0.0 }
  0x9e   : > { %v289_v53 = vsel %vm222_vm0, %v285_v50, 0.0 }
  0x9f   : > { %v290_v54 = vadd.f32 %v289_v53, %v288_v51 }
  0xa1   : > { %v291_v55 = vadd.f32 %v290_v54, %v286_v52 }
  0xa3   : > { %292 = vst.msk [vmem:[#allocation2] sm:$0xff] %vm222_vm0, %v291_v55 }
  0xaa   : > { %v296_v56 = vld [vmem:[#allocation2] sm:$0xff] }
  0xab   : > { %v297_v57 = vsel %vm222_vm0, %v296_v56, 0.0 }
  0xac   : > { %298 = vadd.xlane.f32.xlu1 %v297_v57 }
 0x139   : > { %v299_v58 = vpop.xlane.xlu1 %298 }
 0x13a   : > { %v300_v59 = vrot.slane %v299_v58, 4 }
 0x13c   : > { %v301_v60 = vadd.f32 %v300_v59, %v299_v58 }
 0x13e   : > { %v302_v61 = vrot.slane %v301_v60, 2 }
 0x140   : > { %v303_v62 = vadd.f32 %v302_v61, %v301_v60 }
 0x142   : > { %v304_v63 = vrot.slane %v303_v62, 1 }
 0x144   : > { %v305_v0 = vadd.f32 %v304_v63, %v303_v62 }
 0x146   : > { %390 = vpush %v305_v0 }
 0x177   : > { %s391_s23 = spop %390 }
 0x178   : > { %s307_s27 = smul.f32 0.001953125, %s391_s23 }
 0x17a   : > { %v308_v1 = vstv %s307_s27 }
 0x17b   : > { %310 = vst.msk [vmem:[%s217_s26] sm:$0x1] %vm309_vm7, %v308_v1 }
 0x17c PF: > { %s12_s11 = sadd.s32 1, %s449_s11   ;;  %s519_s9 = smov %s445_s10 }
 0x17d   : > { %p9_p7 = scmp.ge.s32.totalorder %s12_s11, 4   ;;  %s520_s10 = smov %s522_s12 }
 0x17f   :  { %11 = sbr.rel (!%p9_p7) target bundleno = 2 (0x2), region = 69 }

</bundles_post_ra>
